<compile_context>
chip_gen: v5e
topology: v5e:2x2
jax: 0.10.0
libtpu: 0.0.40
codegen_flags: <defaults>
</compile_context>

<pallas_src>
import math

import numpy as np
import jax
import jax.numpy as jnp
from jax.experimental import pallas as pl
from jax.experimental.pallas import tpu as pltpu


# ----------------------------- sincos pos-embed (host-side, numpy) ----------

def get_1d_sincos_pos_embed_from_grid(embed_dim, pos):
    assert embed_dim % 2 == 0
    omega = np.arange(embed_dim // 2, dtype=float)
    omega /= embed_dim / 2.0
    omega = 1.0 / 10000 ** omega
    pos = pos.reshape(-1)
    out = np.einsum("m,d->md", pos, omega)
    return np.concatenate([np.sin(out), np.cos(out)], axis=1)


def get_2d_sincos_pos_embed_from_grid(embed_dim, grid):
    assert embed_dim % 2 == 0
    emb_h = get_1d_sincos_pos_embed_from_grid(embed_dim // 2, grid[0])
    emb_w = get_1d_sincos_pos_embed_from_grid(embed_dim // 2, grid[1])
    return np.concatenate([emb_h, emb_w], axis=1)


def get_2d_sincos_pos_embed(embed_dim, grid_size, add_cls_token=False):
    grid_h = np.arange(grid_size, dtype=np.float32)
    grid_w = np.arange(grid_size, dtype=np.float32)
    grid = np.meshgrid(grid_w, grid_h)
    grid = np.stack(grid, axis=0).reshape([2, 1, grid_size, grid_size])
    pos_embed = get_2d_sincos_pos_embed_from_grid(embed_dim, grid)
    if add_cls_token:
        pos_embed = np.concatenate([np.zeros([1, embed_dim]), pos_embed], axis=0)
    return pos_embed


def _round_up(x, m):
    return ((x + m - 1) // m) * m


def _choose_tiles(M):
    """Pick the M-tile size.  Targets the 256-wide v6e/v7x MXU, and makes sure
    the grid has >= 2 steps for nontrivial M so both v7x TensorCores work."""
    m8 = _round_up(max(M, 1), 8)
    TM_MAX = 256
    # TODO(synk): prefer tm=128 on v5e (128-wide MXU) via pltpu.get_tpu_info().
    if m8 <= 64:
        tm = m8                            # tiny problem: one grid step
    elif m8 <= 2 * TM_MAX:
        tm = _round_up((m8 + 1) // 2, 8)   # exactly 2 steps
    else:
        tm = TM_MAX
    m_pad = _round_up(m8, tm)
    return tm, m_pad


# ----------------------------- Pallas kernel ---------------------------------

def gather_patch_embed_pallas(patches_flat, ids_flat, w_pad_bf16, posb_rows, *, tm):
    """out[i] = patches_flat[ids_flat[i]] @ W + posb_rows[i]   (only kept tokens)

    patches_flat : (B*NP, K_pad) f32 — stays in HBM (pl.ANY), gathered by DMA.
    ids_flat     : (M_pad,) int32   — scalar-prefetched row indices into the slab.
    w_pad_bf16   : (K_pad, H_pad) bf16 — VMEM-resident projection weight.
    posb_rows    : (M_pad, H_pad) f32 — pos+bias already gathered per kept token.
    Returns (M_pad, H_pad) f32.
    """
    bnp, k_pad = patches_flat.shape
    _, h_pad = w_pad_bf16.shape
    m_pad = ids_flat.shape[0]
    assert m_pad % tm == 0 and tm % 8 == 0
    assert k_pad % 128 == 0 and h_pad % 128 == 0

    # Row chunks per grid step: issue every gather DMA up front, then
    # wait + matmul chunk by chunk so later chunks' DMAs hide under earlier
    # chunks' MXU work.  Purely intra-step => safe under megacore splitting.
    chunk = max(8, _round_up(tm // 2, 8))
    phases = []
    s = 0
    while s < tm:
        n = min(chunk, tm - s)
        phases.append((s, n))
        s += n
    n_ph = len(phases)

    def kernel(ids_ref, patches_hbm, w_ref, posb_ref, out_ref, xk_ref, sems):
        base = pl.program_id(0) * tm

        # Issue all per-row gather DMAs (HBM patch slab -> VMEM scratch rows).
        for p, (s0, n) in enumerate(phases):
            @pl.loop(s0, s0 + n)
            def _start(i):
                r = ids_ref[base + i]
                pltpu.make_async_copy(patches_hbm.at[r], xk_ref.at[i],
                                      sems.at[p]).start()

        w = w_ref[...]   # hoisted; weight tile is VMEM-resident across steps

        for p, (s0, n) in enumerate(phases):
            @pl.loop(s0, s0 + n)
            def _wait(i):
                # Wait descriptor: source index is irrelevant, shape must match.
                pltpu.make_async_copy(patches_hbm.at[0], xk_ref.at[i],
                                      sems.at[p]).wait()
            x = xk_ref[pl.ds(s0, n), :].astype(jnp.bfloat16)
            y = jnp.dot(x, w, preferred_element_type=jnp.float32)
            # TODO(synk): emit bf16 here if the downstream transformer is bf16.
            out_ref[pl.ds(s0, n), :] = y + posb_ref[pl.ds(s0, n), :]

    # Explicit scoped-VMEM budget: weight + double-buffered posb/out tiles +
    # gather scratch + headroom (review item for v5e/v6e default limits).
    vmem_bytes = (2 * k_pad * h_pad * 2      # weight (allow double buffer)
                  + 2 * tm * h_pad * 4      # posb input tiles
                  + 2 * tm * h_pad * 4      # output tiles
                  + tm * k_pad * 4          # gathered-patch scratch
                  + (2 << 20))              # headroom
    vmem_limit = int(min(96 << 20, max(8 << 20, vmem_bytes)))

    return pl.pallas_call(
        kernel,
        out_shape=jax.ShapeDtypeStruct((m_pad, h_pad), jnp.float32),
        grid_spec=pltpu.PrefetchScalarGridSpec(
            num_scalar_prefetch=1,
            grid=(m_pad // tm,),
            in_specs=[
                pl.BlockSpec(memory_space=pl.ANY),                    # patch slab, HBM
                pl.BlockSpec((k_pad, h_pad), lambda m, ids: (0, 0)),  # weight, resident
                pl.BlockSpec((tm, h_pad), lambda m, ids: (m, 0)),     # pos+bias rows
            ],
            out_specs=pl.BlockSpec((tm, h_pad), lambda m, ids: (m, 0)),
            scratch_shapes=[
                pltpu.VMEM((tm, k_pad), jnp.float32),   # gathered kept patches
                pltpu.SemaphoreType.DMA((n_ph,)),       # one DMA sem per chunk
            ],
        ),
        compiler_params=pltpu.CompilerParams(
            dimension_semantics=("parallel",),   # v7x: both TCs split M tiles
            vmem_limit_bytes=vmem_limit),
    )(ids_flat, patches_flat, w_pad_bf16, posb_rows)


# ----------------------------- Module (params + forward) ---------------------

class ViTDiffMAEEmbeddingsPallas:
    def __init__(self, *, image_size=16, patch_size=4, num_channels=4,
                 hidden_size=32, mask_ratio=0.75, initializer_range=0.02,
                 key=None):
        self.image_size = (image_size, image_size)
        self.patch_size = (patch_size, patch_size)
        self.num_channels = num_channels
        self.hidden_size = hidden_size
        self.mask_ratio = mask_ratio
        grid = image_size // patch_size
        self.num_patches = grid * grid
        self.len_keep = int(self.num_patches * (1 - mask_ratio))

        if key is None:
            key = jax.random.PRNGKey(0)
        k_w, k_b, k_cls = jax.random.split(key, 3)

        # Conv2d(num_channels, hidden, kernel=patch, stride=patch):
        # PyTorch weight (hidden, C, P, P), xavier_uniform on flattened view.
        fan_in = num_channels * patch_size * patch_size
        fan_out = hidden_size
        bound = math.sqrt(6.0 / (fan_in + fan_out))
        w_flat = jax.random.uniform(k_w, (hidden_size, fan_in),
                                    minval=-bound, maxval=bound,
                                    dtype=jnp.float32)
        self.proj_weight = w_flat.T                              # (C*P*P, hidden)

        # Conv2d default bias init: U(-1/sqrt(fan_in), 1/sqrt(fan_in))
        b_bound = 1.0 / math.sqrt(fan_in)
        self.proj_bias = jax.random.uniform(k_b, (hidden_size,),
                                            minval=-b_bound, maxval=b_bound,
                                            dtype=jnp.float32)

        # cls token ~ N(0, initializer_range)
        self.cls_token = (initializer_range *
                          jax.random.normal(k_cls, (1, 1, hidden_size),
                                            dtype=jnp.float32))

        # Fixed 2D sincos position embeddings (with CLS slot), non-trainable.
        pos = get_2d_sincos_pos_embed(hidden_size,
                                      int(self.num_patches ** 0.5),
                                      add_cls_token=True)
        self.position_embeddings = jnp.asarray(pos, jnp.float32)[None]  # (1, NP+1, H)

        # Perf: fold the conv bias into the patch-token positional embedding
        # once on the host -> one fused add in the kernel.
        self.pos_plus_bias = (self.position_embeddings[0, 1:, :]
                              + self.proj_bias[None, :])                # (NP, H)

        # Lane-dense padding for small configs (no-op when K, H are already
        # multiples of 128, e.g. ViT-Base K=H=768).
        self.k = fan_in
        self.k_pad = _round_up(fan_in, 128)
        self.h_pad = _round_up(hidden_size, 128)
        w_pad = jnp.zeros((self.k_pad, self.h_pad), jnp.bfloat16)
        self.proj_weight_bf16_pad = w_pad.at[:fan_in, :hidden_size].set(
            self.proj_weight.astype(jnp.bfloat16))                     # (K_pad, H_pad)
        pbp = jnp.zeros((self.num_patches, self.h_pad), jnp.float32)
        self.pos_plus_bias_pad = pbp.at[:, :hidden_size].set(self.pos_plus_bias)

    # --- glue: NCHW -> (B, NP, C*P*P), channel-major per patch -------------
    # TODO(synk): fuse this transpose into the pallas_call operand
    # (allow_input_fusion) or read NCHW directly in-kernel at real image sizes.
    def _to_patches(self, pixel_values):
        B, C, Himg, Wimg = pixel_values.shape
        P = self.patch_size[0]
        Hp, Wp = Himg // P, Wimg // P
        x = pixel_values.reshape(B, C, Hp, P, Wp, P)
        x = jnp.transpose(x, (0, 2, 4, 1, 3, 5))         # (B, Hp, Wp, C, P, P)
        return x.reshape(B, Hp * Wp, C * P * P)

    def __call__(self, pixel_values, noise=None, *, noise_key=None):
        B, C, Hi, Wi = pixel_values.shape
        assert C == self.num_channels
        assert (Hi, Wi) == self.image_size
        NP, Hid, L, K = self.num_patches, self.hidden_size, self.len_keep, self.k

        patches = self._to_patches(pixel_values.astype(jnp.float32))   # (B, NP, K)
        patches_flat = patches.reshape(B * NP, K)
        if self.k_pad != K:
            patches_flat = jnp.pad(patches_flat, ((0, 0), (0, self.k_pad - K)))

        if noise is None:
            if noise_key is None:
                noise_key = jax.random.PRNGKey(1)   # deterministic fallback (tests)
            noise = jax.random.uniform(noise_key, (B, NP), dtype=jnp.float32)

        # Masking bookkeeping (argsort / gather indices): plain JAX.
        ids_shuffle = jnp.argsort(noise, axis=1)
        ids_restore = jnp.argsort(ids_shuffle, axis=1)
        ids_keep = ids_shuffle[:, :L]                                   # (B, L)
        mask = jnp.ones((B, NP), jnp.float32).at[:, :L].set(0.0)
        mask = jnp.take_along_axis(mask, ids_restore, axis=1)

        # Flattened gather indices: only kept (unmasked) patches are projected.
        ids_patch = ids_keep.astype(jnp.int32).reshape(-1)              # (M,)
        ids_flat = (ids_keep.astype(jnp.int32)
                    + (jnp.arange(B, dtype=jnp.int32) * NP)[:, None]).reshape(-1)

        M = B * L
        tm, m_pad = _choose_tiles(M)
        pad = m_pad - M
        if pad:
            # Padded rows re-use index 0; their outputs are sliced off below
            # (do NOT alias/donate the output buffer while this is the case).
            ids_patch = jnp.pad(ids_patch, (0, pad))
            ids_flat = jnp.pad(ids_flat, (0, pad))

        # pos+bias rows gathered on the XLA side (tiny M x H_pad), fed to the
        # kernel as a contiguous auto-pipelined input.
        posb_rows = jnp.take(self.pos_plus_bias_pad, ids_patch, axis=0)  # (m_pad, H_pad)

        out = gather_patch_embed_pallas(patches_flat, ids_flat,
                                        self.proj_weight_bf16_pad, posb_rows,
                                        tm=tm)                           # (m_pad, H_pad)
        embeddings = out[:M, :Hid].reshape(B, L, Hid)

        cls_token = self.cls_token + self.position_embeddings[:, :1, :]
        cls_tokens = jnp.broadcast_to(cls_token, (B, 1, Hid))
        embeddings = jnp.concatenate([cls_tokens, embeddings], axis=1)
        return embeddings, mask, ids_restore, noise

    # Pure-JAX reference (PyTorch op order; same bf16 operand rounding).
    # NOTE: activations are rounded to bf16 before the MXU in both kernel and
    # reference; a true-f32 PyTorch Conv2d differs by bf16 rounding.
    def _reference_forward(self, pixel_values, noise):
        B = pixel_values.shape[0]
        NP, Hid, L = self.num_patches, self.hidden_size, self.len_keep
        patches = self._to_patches(pixel_values.astype(jnp.float32))    # (B, NP, K)
        x = jnp.einsum("bnk,kh->bnh", patches.astype(jnp.bfloat16),
                       self.proj_weight.astype(jnp.bfloat16),
                       preferred_element_type=jnp.float32)
        x = x + self.pos_plus_bias[None]
        ids_keep = jnp.argsort(noise, axis=1)[:, :L]
        rows = (ids_keep + jnp.arange(B)[:, None] * NP).reshape(-1)
        x_keep = x.reshape(B * NP, Hid)[rows].reshape(B, L, Hid)
        cls_token = self.cls_token + self.position_embeddings[:, :1, :]
        cls_tokens = jnp.broadcast_to(cls_token, (B, 1, Hid))
        return jnp.concatenate([cls_tokens, x_keep], axis=1)


# ----------------------------- main ------------------------------------------

if __name__ == "__main__":
    key = jax.random.PRNGKey(0)
    k_params, k_pix, k_noise = jax.random.split(key, 3)

    B, C, HW = 2, 4, 16
    module = ViTDiffMAEEmbeddingsPallas(
        image_size=HW, patch_size=4, num_channels=C, hidden_size=32,
        mask_ratio=0.75, initializer_range=0.02, key=k_params)

    pixel_values = jax.random.normal(k_pix, (B, C, HW, HW), dtype=jnp.float32)

    embeddings, mask, ids_restore, noise = module(pixel_values,
                                                  noise_key=k_noise)
    jax.block_until_ready((embeddings, mask, ids_restore, noise))

    # shape checks implied by the PyTorch module
    L = module.len_keep
    assert embeddings.shape == (B, 1 + L, 32)
    assert mask.shape == (B, module.num_patches)
    assert ids_restore.shape == (B, module.num_patches)
    assert noise.shape == (B, module.num_patches)

    # numerical check against a pure-JAX reference
    ref = module._reference_forward(pixel_values, noise)
    np.testing.assert_allclose(np.asarray(embeddings), np.asarray(ref),
                               atol=1e-4, rtol=1e-4)

    print("KERNEL_OK")
</pallas_src>

<mosaic_0001>
module attributes {stable_mosaic.version = 11 : i64} {
  func.func @kernel(%arg0: i32, %arg1: memref<8xi32, #tpu.memory_space<smem>>, %arg2: memref<32x128xf32, #tpu.memory_space<any>>, %arg3: memref<128x128xbf16, #tpu.memory_space<vmem>>, %arg4: memref<8x128xf32, #tpu.memory_space<vmem>>, %arg5: memref<8x128xf32, #tpu.memory_space<vmem>>, %arg6: memref<8x128xf32, #tpu.memory_space<vmem>>, %arg7: memref<1x!tpu.dma_semaphore, #tpu.memory_space<semaphore_mem>>) attributes {dimension_semantics = [#tpu.dimension_semantics<parallel>], iteration_bounds = array<i64: 1>, scalar_prefetch = 1 : i64, scratch_operands = 2 : i64, tpu.core_type = #tpu.core_type<tc>, window_params = [{}, {pipeline_mode = #tpu.pipeline_mode<synchronous>, transform_indices = @transform_1, window_bounds = array<i64: 128, 128>}, {transform_indices = @transform_2, window_bounds = array<i64: 8, 128>}, {transform_indices = @transform_3, window_bounds = array<i64: 8, 128>}]} {
    %c8_i32 = arith.constant 8 : i32
    %0 = arith.muli %arg0, %c8_i32 : i32
    %c0_i32 = arith.constant 0 : i32
    %c8_i32_0 = arith.constant 8 : i32
    %1 = arith.addi %c0_i32, %c8_i32_0 : i32
    %c1_i32 = arith.constant 1 : i32
    scf.for %arg8 = %c0_i32 to %1 step %c1_i32  : i32 {
      %c1_i32_13 = arith.constant 1 : i32
      %10 = arith.muli %arg8, %c1_i32_13 : i32
      %c0_i32_14 = arith.constant 0 : i32
      %11 = arith.addi %c0_i32_14, %10 : i32
      %12 = arith.addi %0, %11 : i32
      %13 = arith.index_cast %12 : i32 to index
      %14 = memref.load %arg1[%13] : memref<8xi32, #tpu.memory_space<smem>>
      %c0_i32_15 = arith.constant 0 : i32
      %c0_i32_16 = arith.constant 0 : i32
      %15 = tpu.memref_slice %arg2[%14, %c0_i32_16] : memref<32x128xf32, #tpu.memory_space<any>> -> memref<1x128xf32, #tpu.memory_space<any>>
      %16 = tpu.memref_squeeze %15 : memref<1x128xf32, #tpu.memory_space<any>> -> memref<128xf32, #tpu.memory_space<any>>
      %c0_i32_17 = arith.constant 0 : i32
      %17 = tpu.memref_slice %arg6[%11, %c0_i32_17] : memref<8x128xf32, #tpu.memory_space<vmem>> -> memref<1x128xf32, #tpu.memory_space<vmem>>
      %18 = tpu.memref_squeeze %17 : memref<1x128xf32, #tpu.memory_space<vmem>> -> memref<128xf32, #tpu.memory_space<vmem>>
      %19 = tpu.memref_slice %arg7[%c0_i32_15] : memref<1x!tpu.dma_semaphore, #tpu.memory_space<semaphore_mem>> -> memref<1x!tpu.dma_semaphore, #tpu.memory_space<semaphore_mem>>
      %20 = tpu.memref_squeeze %19 : memref<1x!tpu.dma_semaphore, #tpu.memory_space<semaphore_mem>> -> memref<!tpu.dma_semaphore, #tpu.memory_space<semaphore_mem>>
      tpu.enqueue_dma source(%16 : memref<128xf32, #tpu.memory_space<any>>) target(%18 : memref<128xf32, #tpu.memory_space<vmem>>) target_semaphore(%20 : memref<!tpu.dma_semaphore, #tpu.memory_space<semaphore_mem>>)
    }
    %c8_i32_1 = arith.constant 8 : i32
    %c0 = arith.constant 0 : index
    %c0_2 = arith.constant 0 : index
    %2 = vector.load %arg3[%c0, %c0_2] : memref<128x128xbf16, #tpu.memory_space<vmem>>, vector<128x128xbf16>
    %c0_i32_3 = arith.constant 0 : i32
    %c8_i32_4 = arith.constant 8 : i32
    %3 = arith.addi %c0_i32_3, %c8_i32_4 : i32
    %c1_i32_5 = arith.constant 1 : i32
    scf.for %arg8 = %c0_i32_3 to %3 step %c1_i32_5  : i32 {
      %c1_i32_13 = arith.constant 1 : i32
      %10 = arith.muli %arg8, %c1_i32_13 : i32
      %c0_i32_14 = arith.constant 0 : i32
      %11 = arith.addi %c0_i32_14, %10 : i32
      %c0_i32_15 = arith.constant 0 : i32
      %c0_i32_16 = arith.constant 0 : i32
      %c0_i32_17 = arith.constant 0 : i32
      %12 = tpu.memref_slice %arg2[%c0_i32_15, %c0_i32_17] : memref<32x128xf32, #tpu.memory_space<any>> -> memref<1x128xf32, #tpu.memory_space<any>>
      %13 = tpu.memref_squeeze %12 : memref<1x128xf32, #tpu.memory_space<any>> -> memref<128xf32, #tpu.memory_space<any>>
      %c0_i32_18 = arith.constant 0 : i32
      %14 = tpu.memref_slice %arg6[%11, %c0_i32_18] : memref<8x128xf32, #tpu.memory_space<vmem>> -> memref<1x128xf32, #tpu.memory_space<vmem>>
      %15 = tpu.memref_squeeze %14 : memref<1x128xf32, #tpu.memory_space<vmem>> -> memref<128xf32, #tpu.memory_space<vmem>>
      %16 = tpu.memref_slice %arg7[%c0_i32_16] : memref<1x!tpu.dma_semaphore, #tpu.memory_space<semaphore_mem>> -> memref<1x!tpu.dma_semaphore, #tpu.memory_space<semaphore_mem>>
      %17 = tpu.memref_squeeze %16 : memref<1x!tpu.dma_semaphore, #tpu.memory_space<semaphore_mem>> -> memref<!tpu.dma_semaphore, #tpu.memory_space<semaphore_mem>>
      tpu.wait_dma2 semaphore(%17 : memref<!tpu.dma_semaphore, #tpu.memory_space<semaphore_mem>>) src(%13 : memref<128xf32, #tpu.memory_space<any>>) dst(%15 : memref<128xf32, #tpu.memory_space<vmem>>)
    }
    %c8_i32_6 = arith.constant 8 : i32
    %c0_7 = arith.constant 0 : index
    %c0_8 = arith.constant 0 : index
    %4 = vector.load %arg6[%c0_7, %c0_8] : memref<8x128xf32, #tpu.memory_space<vmem>>, vector<8x128xf32>
    %5 = arith.truncf %4 : vector<8x128xf32> to vector<8x128xbf16>
    %cst = arith.constant dense<0.000000e+00> : vector<8x128xf32>
    %6 = tpu.matmul %5, %2, %cst {dimension_numbers = #tpu.dot_dimension_numbers<[1], [0], [0], [1], [0, 0, 1, 1], [], []>} : vector<8x128xbf16>, vector<128x128xbf16>, vector<8x128xf32> -> vector<8x128xf32>
    %c0_9 = arith.constant 0 : index
    %c0_10 = arith.constant 0 : index
    %7 = vector.load %arg4[%c0_9, %c0_10] : memref<8x128xf32, #tpu.memory_space<vmem>>, vector<8x128xf32>
    %8 = arith.addf %6, %7 : vector<8x128xf32>
    %c0_11 = arith.constant 0 : index
    %c0_12 = arith.constant 0 : index
    %9 = vector.load %arg5[%c0_11, %c0_12] : memref<8x128xf32, #tpu.memory_space<vmem>>, vector<8x128xf32>
    tpu.vector_store %arg5[%c0_11, %c0_12], %8 {strides = array<i32>} : memref<8x128xf32, #tpu.memory_space<vmem>>, vector<8x128xf32>,
    return
  }
  func.func @transform_1(%arg0: i32, %arg1: memref<8xi32, #tpu.memory_space<smem>>) -> (i32, i32) {
    %c0_i32 = arith.constant 0 : i32
    %c0_i32_0 = arith.constant 0 : i32
    %c0_i32_1 = arith.constant 0 : i32
    return %c0_i32, %c0_i32_0 : i32, i32
  }
  func.func @transform_2(%arg0: i32, %arg1: memref<8xi32, #tpu.memory_space<smem>>) -> (i32, i32) {
    %c0_i32 = arith.constant 0 : i32
    %c0_i32_0 = arith.constant 0 : i32
    return %arg0, %c0_i32 : i32, i32
  }
  func.func @transform_3(%arg0: i32, %arg1: memref<8xi32, #tpu.memory_space<smem>>) -> (i32, i32) {
    %c0_i32 = arith.constant 0 : i32
    %c0_i32_0 = arith.constant 0 : i32
    return %arg0, %c0_i32 : i32, i32
  }
}

</mosaic_0001>

<bundles_post_ra>
// kernel: tpu_custom_call.1
= control target key start
LH: loop header
LB: loop body
LE: loop exit
PB: predicated region body
PF: predicated region fallthrough
CT: control target
= control target key end

     0   :  { %s398_s18 = smov [#allocation5]   ;;  %s461_s0 = inlined_call_operand.hbm [shape: s32[8], index: 0, kind: input, shape index: {}]   ;;  %s462_s1 = inlined_call_operand.hbm [shape: f32[32,128], index: 1, kind: input, shape index: {}]   ;;  %s463_s2 = inlined_call_operand.hbm [shape: bf16[128,128], index: 2, kind: input, shape index: {}]   ;;  %s464_s3 = inlined_call_operand.hbm [shape: f32[8,128], index: 3, kind: input, shape index: {}]   ;;  %s465_s4 = inlined_call_operand.hbm [shape: f32[8,128], index: 4, kind: output, shape index: {}]  }
   0x1   :  { %s10_s17 = sshll.u32 %s461_s0, 4  ;;  %s11_s17 = int_to_ptr.hbm [resolvable:$true] %s10_s17 }
   0x2   :  { %13 = dma.hbm_to_smem %s11_s17, 16, %s398_s18, [#allocation4] }
   0x3   :  { %380 = dma.done.wait [#allocation4], 16 }
   0x4   :  { %381 = vsyncadd [#allocation4], 4294967280 }
   0x5   :  { %16 = sfence }
   0x6   :  { %17 = vsyncpa [#allocation7], 0 }
   0x7   :  { %18 = vsyncpa [#allocation10], 0 }
   0x8   :  { %19 = vsyncpa [#allocation8], 0  ;;  %s24_s21 = sshll.u32 %s463_s2, 4  ;;  %s399_s22 = smov [#allocation6]   ;;  %s25_s21 = int_to_ptr.hbm [resolvable:$true] %s24_s21 }
   0x9   :  { %s26_s23 = sshll.u32 %s399_s22, 4  ;;  %s38_s0 = sshll.u32 %s464_s3, 4  ;;  %s27_s23 = int_to_ptr.vmem [resolvable:$true] %s26_s23  ;;  %s39_s0 = int_to_ptr.hbm [resolvable:$true] %s38_s0 }
   0xa   :  { %s400_s26 = smov 64   ;;  %s401_s27 = smov 4  }
   0xb   :  { %32 = dma.hbm_to_vmem [thread:$0]  %s25_s21, 1024, %s27_s23, [#allocation7], %s400_s26, %s400_s26, %s401_s27  }
   0xc   :  { %s402_s28 = smov [#allocation9]  }
   0xd   :  { %s40_s29 = sshll.u32 %s402_s28, 4  ;;  %s41_s29 = int_to_ptr.vmem [resolvable:$true] %s40_s29 }
   0xe   :  { %43 = dma.hbm_to_vmem [thread:$0]  %s39_s0, 128, %s41_s29, [#allocation10]  }
   0xf   :  { %382 = dma.done.wait [#allocation7], 1024  }
  0x10   :  { %383 = vsyncadd [#allocation7], 4294966272 }
  0x11   :  { %384 = dma.done.wait [#allocation10], 128  }
  0x12   :  { %385 = vsyncadd [#allocation10], 4294967168  ;;  %s439_s2 = smov 0  }
  0x13 LB: > { %s60_s3 = sld [smem:[#allocation5 + %s392_s2]]  ;;  %s62_s30 = scalar_lea.vmem [#allocation2], %s392_s2  ;;  %s392_s2 = sphi %s439_s2, %s58_s2  }
  0x14   : > { %s72_s5 = sshll.u32 %s62_s30, 4  ;;  %s328_s14 = scalar_lea.hbm %s462_s1, 32  ;;  %s73_s5 = int_to_ptr.vmem [resolvable:$true] %s72_s5 }
  0x19   : > { %s61_s8 = scalar_lea.hbm %s462_s1, %s60_s3 }
  0x1a   : > { %s70_s9 = sshll.u32 %s61_s8, 4  ;;  %s71_s9 = int_to_ptr.hbm [resolvable:$true] %s70_s9 }
  0x1b   : > { %s324_s10 = sshra.s32 %s71_s9, 4  ;;  %s325_s10 = int_to_ptr.hbm [resolvable:$true] %s324_s10 }
  0x1c   : > { %s326_s11 = scalar_lea.hbm %s325_s10, 1  ;;  %p329_p1 = scmp.lt.s32.totalorder %s325_s10, %s462_s1 }
  0x1d   : > { %p327_p0 = scmp.ne.s32.totalorder %s325_s10, %s326_s11  ;;  %p330_p2 = scmp.lt.s32.totalorder %s328_s14, %s326_s11 }
  0x1f   : > { %p331_p3 = por %p330_p2, %p329_p1 }
  0x21   : > { %p332_p4 = pnand %p331_p3, %p327_p0 }
  0x23   : > { %335 = shalt.err (!%p332_p4)  }
  0x24   : > { %s336_s17 = sshra.s32 %s73_s5, 4  ;;  %s403_s19 = smov [#allocation2]   ;;  %s337_s17 = int_to_ptr.vmem [resolvable:$true] %s336_s17 }
  0x25   : > { %s338_s18 = scalar_lea.vmem %s337_s17, 1  ;;  %s340_s20 = scalar_lea.vmem %s403_s19, 8 }
  0x26   : > { %p339_p5 = scmp.ne.s32.totalorder %s337_s17, %s338_s18  ;;  %p341_p6 = scmp.lt.s32.totalorder %s337_s17, [#allocation2] }
  0x27   : > { %p342_p7 = scmp.lt.s32.totalorder %s340_s20, %s338_s18 }
  0x29   : > { %p343_p8 = por %p342_p7, %p341_p6 }
  0x2b   : > { %p344_p9 = pnand %p343_p8, %p339_p5 }
  0x2d   : > { %347 = shalt.err (!%p344_p9)  }
  0x2e   : > { %75 = dma.hbm_to_vmem [thread:$0]  %s71_s9, 16, %s73_s5, [#allocation3] }
  0x2f   : > { %s58_s2 = sadd.s32 1, %s392_s2  }
  0x30   : > { %p55_p10 = scmp.ge.s32.totalorder %s58_s2, 8  }
  0x31   :  { %v203_v0 = vld [vmem:[#allocation6] sm:$0xf] (%p55_p10)  ;;  %v234_v1 = vld [vmem:[#allocation6] sm:$0xf0] (%p55_p10)  ;;  %v207_v2 = vld [vmem:[#allocation6 + $0x8] sm:$0xf] (%p55_p10) }
  0x32   :  { %57 = sbr.rel (!%p55_p10) target bundleno = 19 (0x13), region = 56  ;;  %v235_v3 = vld [vmem:[#allocation6 + $0x8] sm:$0xf0] (%p55_p10)  ;;  %v211_v4 = vld [vmem:[#allocation6 + $0x10] sm:$0xf] (%p55_p10)  ;;  %s394_s21 = smov (%p55_p10), 0  }
  0x33   :  { %v236_v5 = vld [vmem:[#allocation6 + $0x10] sm:$0xf0] (%p55_p10)  ;;  %v215_v6 = vld [vmem:[#allocation6 + $0x18] sm:$0xf] (%p55_p10)  ;;  %v237_v7 = vld [vmem:[#allocation6 + $0x18] sm:$0xf0] (%p55_p10) }
  0x34   :  { %v219_v8 = vld [vmem:[#allocation6 + $0x20] sm:$0xf] (%p55_p10)  ;;  %v238_v9 = vld [vmem:[#allocation6 + $0x20] sm:$0xf0] (%p55_p10)  ;;  %v223_v10 = vld [vmem:[#allocation6 + $0x28] sm:$0xf] (%p55_p10) }
  0x35   :  { %v239_v11 = vld [vmem:[#allocation6 + $0x28] sm:$0xf0] (%p55_p10)  ;;  %v227_v12 = vld [vmem:[#allocation6 + $0x30] sm:$0xf] (%p55_p10)  ;;  %v240_v13 = vld [vmem:[#allocation6 + $0x30] sm:$0xf0] (%p55_p10) }
  0x36   :  { %v231_v14 = vld [vmem:[#allocation6 + $0x38] sm:$0xf] (%p55_p10)  ;;  %v241_v15 = vld [vmem:[#allocation6 + $0x38] sm:$0xf0] (%p55_p10) }
  0x37 LB: > { %386 = dma.done.wait [#allocation3], 16  ;;  %s396_s21 = sphi %s394_s21, %s97_s21  }
  0x38   : > { %387 = vsyncadd [#allocation3], 4294967280  ;;  %s97_s21 = sadd.s32 1, %s396_s21  }
  0x39   : > { %p94_p11 = scmp.ge.s32.totalorder %s97_s21, 8  }
  0x3a   :  { %v232_v16 = vor.u32 (%p94_p11), %v241_v15, %v231_v14  ;;  %v228_v17 = vor.u32 (%p94_p11), %v240_v13, %v227_v12  ;;  %v224_v18 = vor.u32 (%p94_p11), %v239_v11, %v223_v10  ;;  %v220_v19 = vor.u32 (%p94_p11), %v238_v9, %v219_v8  ;;  %v100_v24 = vld [vmem:[#allocation2] sm:$0xff] (%p94_p11)  ;;  %v102_v26 = vld [vmem:[#allocation9] sm:$0xff] (%p94_p11)  ;;  %s404_s1 = smov (%p94_p11), [#allocation11]   ;;  %s172_s25 = sshll.u32 (%p94_p11), %s465_s4, 4  ;;  %s173_s25 = int_to_ptr.hbm [resolvable:$true] %s172_s25 }
  0x3b   :  { %96 = sbr.rel (!%p94_p11) target bundleno = 55 (0x37), region = 67  ;;  %v216_v20 = vor.u32 (%p94_p11), %v237_v7, %v215_v6  ;;  %v212_v21 = vor.u32 (%p94_p11), %v236_v5, %v211_v4  ;;  %v208_v22 = vor.u32 (%p94_p11), %v235_v3, %v207_v2  ;;  %v204_v23 = vor.u32 (%p94_p11), %v234_v1, %v203_v0  ;;  %s170_s22 = sshll.u32 (%p94_p11), %s404_s1, 4  ;;  %s171_s22 = int_to_ptr.vmem [resolvable:$true] %s170_s22 }
  0x3c   :  { %151 = vmatpush.bf16.msra.mxu0 (%p94_p11), %v232_v16  ;;  %v101_v25 = vpack.c.bf16 (%p94_p11), %v100_v24, %v100_v24 }
  0x40   :  { %152 = vmatpush.bf16.msra.mxu0 %v228_v17 }
  0x44   :  { %153 = vmatpush.bf16.msra.mxu0 %v224_v18 }
  0x48   :  { %154 = vmatpush.bf16.msra.mxu0 %v220_v19 }
  0x4c   :  { %155 = vmatpush.bf16.msra.mxu0 %v216_v20 }
  0x50   :  { %156 = vmatpush.bf16.msra.mxu0 %v212_v21 }
  0x54   :  { %157 = vmatpush.bf16.msra.mxu0 %v208_v22 }
  0x58   :  { %158 = vmatpush.bf16.msra.mxu0 %v204_v23 }
  0x5b   :  { %159 = vmatmul.bf16.vlgmr.msra.gmra.mxu0 %v101_v25 }
  0xd8   :  { %v160_v27 = vpop.f32.mrf.mxu0 }
  0xd9   :  { %v161_v28 = vadd.f32 %v160_v27, %v102_v26 }
  0xdb   :  { %164 = vst [vmem:[#allocation11] sm:$0xff] %v161_v28 }
  0xdc   :  { %175 = dma.vmem_to_hbm [thread:$0]  %s171_s22, 128, %s173_s25, [#allocation8]  }
  0xe0   :  { %v162_v29 = vpop.f32.mrf.mxu0 }
  0xe1   :  { %388 = dma.done.wait [#allocation8], 128  }
  0xe2   :  { %389 = vsyncadd [#allocation8], 4294967168 }
  0xe3   :  { %180 = vsyncpa [#allocation7], 1 }
  0xe4   :  { %181 = vsyncpa [#allocation10], 1 }
  0xe5   :  { %182 = vsyncpa [#allocation8], 1 }
  0xe6   :  { %183 = vsyncmov [#allocation3] }
  0xe9   :  { %s184_s0 = vpop.sfrf %183 }
  0xea   :  { %p233_p12 = scmp.ne.s32.totalorder %s184_s0, 0 }
  0xec   :  { %188 = shalt.err (%p233_p12)  }

</bundles_post_ra>
